<compile_context>
chip_gen: v6e
topology: v6e:2x2x1
jax: 0.10.0
libtpu: 0.0.40
codegen_flags: <defaults>
</compile_context>

<pallas_src>
import jax
import jax.numpy as jnp
from jax import lax
from jax.experimental import pallas as pl
from jax.experimental.pallas import tpu as pltpu

# ---- static model / problem sizes (small, consistent with the module) ----
B = 2          # batch size
C_IN = 32      # in_channels of the projection head
N = 16         # points/faces per sample (pooled into patches)
P = 8          # max patch count
PROJ = 128     # out_channels (projection dim)
EPS = 1e-5     # BatchNorm1d default eps
M = B * P      # rows of the pooled 2-D slab
COLS = B * N   # columns of the block-diagonal pooling mask
LANES = 128

LOG2_P = 3     # P == 8
LOG2_N = 4     # N == 16
assert P == (1 << LOG2_P) and N == (1 << LOG2_N)

# ---- row offsets inside the single packed operand slab (all rows are 128 lanes, f32) ----
R_W1, R_W2, R_W3 = 0, C_IN, 2 * C_IN                   # 0:32, 32:64, 64:96
R_B1, R_G1, R_BE1 = 3 * C_IN + 0, 3 * C_IN + 1, 3 * C_IN + 2
R_B2, R_G2, R_BE2 = 3 * C_IN + 3, 3 * C_IN + 4, 3 * C_IN + 5
R_G3, R_BE3 = 3 * C_IN + 6, 3 * C_IN + 7
R_LAB = 3 * C_IN + 8                                    # labels row (values 0..P-1, exact in f32)
SLAB_ROWS = ((R_LAB + 1 + 7) // 8) * 8                  # pad to sublane multiple -> 112

# advisory cost estimate (lets XLA schedule/overlap this tiny custom call)
_FLOPS = 2 * M * COLS * C_IN + 2 * M * (2 * C_IN * C_IN + C_IN * PROJ)
_TRANSCENDENTALS = 2 * C_IN + PROJ + M                  # 3 rsqrt vectors + count reciprocals
_BYTES = B * C_IN * N * 4 + SLAB_ROWS * LANES * 4 + M * PROJ * 4 + M * 4


def projection_head_kernel(feat_ref, slab_ref, out_ref, counts_ref):
    # ---- unpack the single packed operand slab with static slices (no runtime index math) ----
    w1 = slab_ref[R_W1:R_W1 + C_IN, 0:C_IN]             # (32, 32)  Conv1 weight.T (in, out)
    w2 = slab_ref[R_W2:R_W2 + C_IN, 0:C_IN]             # (32, 32)  Conv2 weight.T
    w3 = slab_ref[R_W3:R_W3 + C_IN, :]                  # (32, 128) Conv3 weight.T (bias=False)
    b1 = slab_ref[R_B1:R_B1 + 1, 0:C_IN]
    g1 = slab_ref[R_G1:R_G1 + 1, 0:C_IN]
    be1 = slab_ref[R_BE1:R_BE1 + 1, 0:C_IN]
    b2 = slab_ref[R_B2:R_B2 + 1, 0:C_IN]
    g2 = slab_ref[R_G2:R_G2 + 1, 0:C_IN]
    be2 = slab_ref[R_BE2:R_BE2 + 1, 0:C_IN]
    g3 = slab_ref[R_G3:R_G3 + 1, :]
    be3 = slab_ref[R_BE3:R_BE3 + 1, :]
    lab = slab_ref[R_LAB:R_LAB + 1, 0:COLS]              # (1, B*N) patch ids as exact f32 ints

    # ---- block-diagonal patch mask: mask[r, c] = (r//P == c//N) & (labels[c] == r%P) ----
    # pow-2 div/mod as shift/and so they lower to single VPU bit ops.
    row = lax.broadcasted_iota(jnp.int32, (M, COLS), 0)
    col = lax.broadcasted_iota(jnp.int32, (M, COLS), 1)
    same_batch = (row >> LOG2_P) == (col >> LOG2_N)
    patch_id = (row & (P - 1)).astype(jnp.float32)
    mask2d = (same_batch & (lab == patch_id)).astype(jnp.float32)   # (M, COLS) f32 for the MXU

    counts = jnp.sum(mask2d, axis=1, keepdims=True)      # (M, 1) exact small ints in f32
    counts_ref[...] = counts.astype(jnp.int32)

    # features -> (B*N, C_IN): in-kernel per-batch 2-D transpose (XLU slot) + concat;
    # dtype cast happens here so a bf16 producer adds no wrapper-side XLA convert.
    feat = feat_ref[...].astype(jnp.float32)             # (B, C_IN, N)
    feat2d = jnp.concatenate([feat[b].T for b in range(B)], axis=0)   # (B*N, C_IN)

    # patch-mean pooling as ONE 2-D MXU matmul
    pooled = jnp.dot(mask2d, feat2d, preferred_element_type=jnp.float32)   # (M, C_IN)
    pooled = pooled / jnp.where(counts > 0.0, counts, 1.0)

    def bn_train(x, gamma, beta):
        # BatchNorm1d (training-mode batch stats, biased variance, eps=1e-5).
        # Two-pass / centered variance avoids E[x^2]-mu^2 cancellation; gamma fused into rsqrt.
        mu = jnp.mean(x, axis=0, keepdims=True)
        xc = x - mu
        var = jnp.mean(xc * xc, axis=0, keepdims=True)
        return xc * (gamma * lax.rsqrt(var + EPS)) + beta

    # layer 1: Conv1d(C, C, 1) + BN + ReLU
    h = jnp.dot(pooled, w1, preferred_element_type=jnp.float32) + b1
    h = jnp.maximum(bn_train(h, g1, be1), 0.0)
    # layer 2: Conv1d(C, C, 1) + BN + ReLU
    h = jnp.dot(h, w2, preferred_element_type=jnp.float32) + b2
    h = jnp.maximum(bn_train(h, g2, be2), 0.0)
    # layer 3: Conv1d(C, PROJ, 1, bias=False) + BN
    h = jnp.dot(h, w3, preferred_element_type=jnp.float32)
    out_ref[...] = bn_train(h, g3, be3)                  # (M, PROJ) lane-dense (unmasked) store


def projection_head_forward(features, packed_slab):
    """features: (B, C_IN, N) f32/bf16 native NCL; packed_slab: (SLAB_ROWS, 128) f32 from
    pack_operands(). Returns (projected (B, PROJ, P) f32, counts (B, P) int32)."""
    out2d, counts2d = pl.pallas_call(
        projection_head_kernel,
        out_shape=(jax.ShapeDtypeStruct((M, PROJ), jnp.float32),
                   jax.ShapeDtypeStruct((M, 1), jnp.int32)),
        in_specs=[pl.BlockSpec(memory_space=pltpu.MemorySpace.VMEM)] * 2,
        out_specs=(pl.BlockSpec(memory_space=pltpu.MemorySpace.VMEM),
                   pl.BlockSpec(memory_space=pltpu.MemorySpace.VMEM)),
        cost_estimate=pl.CostEstimate(flops=_FLOPS,
                                      transcendentals=_TRANSCENDENTALS,
                                      bytes_accessed=_BYTES),
    )(features, packed_slab)
    # tiny metadata reshape + transpose to PyTorch NCL stays in the wrapper (lane-dense store
    # in-kernel is worth more than avoiding this one small XLA op).
    projected = jnp.transpose(out2d.reshape(B, P, PROJ), (0, 2, 1))   # (B, PROJ, P)
    counts = counts2d.reshape(B, P)
    return projected, counts


def init_params(key):
    ks = jax.random.split(key, 5)
    w1 = jax.random.normal(ks[0], (C_IN, C_IN), jnp.float32) * 0.1   # Conv1d weight.T (in, out)
    b1 = jax.random.normal(ks[1], (C_IN,), jnp.float32) * 0.1
    w2 = jax.random.normal(ks[2], (C_IN, C_IN), jnp.float32) * 0.1
    b2 = jax.random.normal(ks[3], (C_IN,), jnp.float32) * 0.1
    w3 = jax.random.normal(ks[4], (C_IN, PROJ), jnp.float32) * 0.1   # bias=False
    g1 = jnp.ones((C_IN,), jnp.float32); be1 = jnp.zeros((C_IN,), jnp.float32)
    g2 = jnp.ones((C_IN,), jnp.float32); be2 = jnp.zeros((C_IN,), jnp.float32)
    g3 = jnp.ones((PROJ,), jnp.float32); be3 = jnp.zeros((PROJ,), jnp.float32)
    return (w1, b1, g1, be1, w2, b2, g2, be2, w3, g3, be3)


def pack_operands(params, labels):
    """One-time host-side pack of every small operand (weights, BN params, labels) into a
    single (SLAB_ROWS, 128) f32 slab -> the per-call kernel has exactly 2 input DMAs.
    In a real pipeline the labels row would be written by the producer (or via a single
    dynamic_update_slice) rather than re-concatenating per call."""
    w1, b1, g1, be1, w2, b2, g2, be2, w3, g3, be3 = params

    def lane_pad(x):
        return jnp.pad(x, ((0, 0), (0, LANES - x.shape[1])))

    slab = jnp.concatenate([
        lane_pad(w1),                                               # rows   0:32
        lane_pad(w2),                                               # rows  32:64
        w3,                                                         # rows  64:96 (already 128-wide)
        lane_pad(jnp.stack([b1, g1, be1, b2, g2, be2])),            # rows  96:102
        jnp.stack([g3, be3]),                                       # rows 102:104
        lane_pad(labels.reshape(1, COLS).astype(jnp.float32)),      # row  104 (patch ids, exact)
        jnp.zeros((SLAB_ROWS - (R_LAB + 1), LANES), jnp.float32),   # pad to 112 rows
    ], axis=0)
    return slab


def reference_forward(features, labels, params):
    """Pure-JAX reference mirroring the PyTorch math (two-pass BN) for correctness check."""
    w1, b1, g1, be1, w2, b2, g2, be2, w3, g3, be3 = params
    mask = (labels[:, None, :] == jnp.arange(P)[None, :, None]).astype(jnp.float32)  # (B,P,N)
    counts = mask.sum(-1)
    pooled = jnp.einsum('bpn,bcn->bcp', mask, features)              # (B, C, P)
    pooled = pooled / jnp.where(counts != 0, counts, 1.0)[:, None, :]

    def bn(x, g, b):  # x: (B, C, L)
        mu = x.mean(axis=(0, 2), keepdims=True)
        var = ((x - mu) ** 2).mean(axis=(0, 2), keepdims=True)
        return g[None, :, None] * (x - mu) / jnp.sqrt(var + EPS) + b[None, :, None]

    h = jnp.einsum('io,bip->bop', w1, pooled) + b1[None, :, None]
    h = jnp.maximum(bn(h, g1, be1), 0.0)
    h = jnp.einsum('io,bip->bop', w2, h) + b2[None, :, None]
    h = jnp.maximum(bn(h, g2, be2), 0.0)
    h = jnp.einsum('io,bip->bop', w3, h)
    h = bn(h, g3, be3)
    return h, counts.astype(jnp.int32)


if __name__ == "__main__":
    key = jax.random.PRNGKey(0)
    k_feat, k_lab, k_par = jax.random.split(key, 3)
    features = jax.random.normal(k_feat, (B, C_IN, N), jnp.float32)   # native (B, C, N)
    labels = jax.random.randint(k_lab, (B, N), 0, P, jnp.int32)       # patch ids in [0, P)
    params = init_params(k_par)
    packed_slab = pack_operands(params, labels)                       # one-time host-side pack

    pooled, counts = projection_head_forward(features, packed_slab)
    jax.block_until_ready((pooled, counts))

    ref_pooled, ref_counts = reference_forward(features, labels, params)
    assert pooled.shape == (B, PROJ, P) and counts.shape == (B, P)
    assert jnp.allclose(pooled, ref_pooled, atol=1e-4, rtol=1e-4)
    assert jnp.array_equal(counts, ref_counts)
    # TODO(synk): BatchNorm running-mean/var updates (eval-mode stats) and the commented-out
    # counts-based pad_emb masking in ProjectionHead.forward are not modeled (forward uses
    # training-mode batch statistics only).
    print("KERNEL_OK")
</pallas_src>

<mosaic_0001>
module attributes {stable_mosaic.version = 11 : i64} {
  func.func @projection_head_kernel(%arg0: memref<2x32x16xf32, #tpu.memory_space<vmem>>, %arg1: memref<112x128xf32, #tpu.memory_space<vmem>>, %arg2: memref<16x128xf32, #tpu.memory_space<vmem>>, %arg3: memref<16x1xi32, #tpu.memory_space<vmem>>) attributes {dimension_semantics = [], scalar_prefetch = 0 : i64, scratch_operands = 0 : i64, tpu.core_type = #tpu.core_type<tc>} {
    %c0 = arith.constant 0 : index
    %c0_0 = arith.constant 0 : index
    %0 = vector.load %arg1[%c0, %c0_0] : memref<112x128xf32, #tpu.memory_space<vmem>>, vector<32x32xf32>
    %c32 = arith.constant 32 : index
    %c0_1 = arith.constant 0 : index
    %1 = vector.load %arg1[%c32, %c0_1] : memref<112x128xf32, #tpu.memory_space<vmem>>, vector<32x32xf32>
    %c64 = arith.constant 64 : index
    %c0_2 = arith.constant 0 : index
    %2 = vector.load %arg1[%c64, %c0_2] : memref<112x128xf32, #tpu.memory_space<vmem>>, vector<32x128xf32>
    %c96 = arith.constant 96 : index
    %c0_3 = arith.constant 0 : index
    %3 = vector.load %arg1[%c96, %c0_3] : memref<112x128xf32, #tpu.memory_space<vmem>>, vector<1x32xf32>
    %c97 = arith.constant 97 : index
    %c0_4 = arith.constant 0 : index
    %4 = vector.load %arg1[%c97, %c0_4] : memref<112x128xf32, #tpu.memory_space<vmem>>, vector<1x32xf32>
    %c98 = arith.constant 98 : index
    %c0_5 = arith.constant 0 : index
    %5 = vector.load %arg1[%c98, %c0_5] : memref<112x128xf32, #tpu.memory_space<vmem>>, vector<1x32xf32>
    %c99 = arith.constant 99 : index
    %c0_6 = arith.constant 0 : index
    %6 = vector.load %arg1[%c99, %c0_6] : memref<112x128xf32, #tpu.memory_space<vmem>>, vector<1x32xf32>
    %c100 = arith.constant 100 : index
    %c0_7 = arith.constant 0 : index
    %7 = vector.load %arg1[%c100, %c0_7] : memref<112x128xf32, #tpu.memory_space<vmem>>, vector<1x32xf32>
    %c101 = arith.constant 101 : index
    %c0_8 = arith.constant 0 : index
    %8 = vector.load %arg1[%c101, %c0_8] : memref<112x128xf32, #tpu.memory_space<vmem>>, vector<1x32xf32>
    %c102 = arith.constant 102 : index
    %c0_9 = arith.constant 0 : index
    %9 = vector.load %arg1[%c102, %c0_9] : memref<112x128xf32, #tpu.memory_space<vmem>>, vector<1x128xf32>
    %c103 = arith.constant 103 : index
    %c0_10 = arith.constant 0 : index
    %10 = vector.load %arg1[%c103, %c0_10] : memref<112x128xf32, #tpu.memory_space<vmem>>, vector<1x128xf32>
    %c104 = arith.constant 104 : index
    %c0_11 = arith.constant 0 : index
    %11 = vector.load %arg1[%c104, %c0_11] : memref<112x128xf32, #tpu.memory_space<vmem>>, vector<1x32xf32>
    %12 = tpu.iota {dimensions = array<i32: 0>} : vector<16x32xi32>
    %13 = tpu.iota {dimensions = array<i32: 1>} : vector<16x32xi32>
    %c3_i32 = arith.constant 3 : i32
    %14 = vector.broadcast %c3_i32 : i32 to vector<16x32xi32>
    %15 = arith.shrsi %12, %14 : vector<16x32xi32>
    %c4_i32 = arith.constant 4 : i32
    %16 = vector.broadcast %c4_i32 : i32 to vector<16x32xi32>
    %17 = arith.shrsi %13, %16 : vector<16x32xi32>
    %18 = arith.cmpi eq, %15, %17 : vector<16x32xi32>
    %c7_i32 = arith.constant 7 : i32
    %19 = vector.broadcast %c7_i32 : i32 to vector<16x32xi32>
    %20 = arith.andi %12, %19 : vector<16x32xi32>
    %21 = arith.sitofp %20 : vector<16x32xi32> to vector<16x32xf32>
    %22 = vector.broadcast %11 : vector<1x32xf32> to vector<16x32xf32>
    %23 = arith.cmpf oeq, %22, %21 : vector<16x32xf32>
    %24 = arith.andi %18, %23 : vector<16x32xi1>
    %25 = arith.extui %24 : vector<16x32xi1> to vector<16x32xi32>
    %26 = arith.sitofp %25 : vector<16x32xi32> to vector<16x32xf32>
    %cst = arith.constant dense<0.000000e+00> : vector<16xf32>
    %27 = vector.multi_reduction <add>, %26, %cst [1] : vector<16x32xf32> to vector<16xf32>
    %28 = vector.shape_cast %27 : vector<16xf32> to vector<16x1xf32>
    %29 = arith.fptosi %28 : vector<16x1xf32> to vector<16x1xi32>
    %c0_12 = arith.constant 0 : index
    %c0_13 = arith.constant 0 : index
    %30 = vector.load %arg3[%c0_12, %c0_13] : memref<16x1xi32, #tpu.memory_space<vmem>>, vector<16x1xi32>
    tpu.vector_store %arg3[%c0_12, %c0_13], %29 {strides = array<i32>} : memref<16x1xi32, #tpu.memory_space<vmem>>, vector<16x1xi32>,
    %c0_14 = arith.constant 0 : index
    %c0_15 = arith.constant 0 : index
    %c0_16 = arith.constant 0 : index
    %31 = vector.load %arg0[%c0_14, %c0_15, %c0_16] : memref<2x32x16xf32, #tpu.memory_space<vmem>>, vector<2x32x16xf32>
    %32 = vector.extract_strided_slice %31 {offsets = [0, 0, 0], sizes = [1, 32, 16], strides = [1, 1, 1]} : vector<2x32x16xf32> to vector<1x32x16xf32>
    %33 = vector.shape_cast %32 : vector<1x32x16xf32> to vector<32x16xf32>
    %34 = tpu.transpose %33, [1, 0] : vector<32x16xf32> -> vector<16x32xf32>
    %35 = vector.extract_strided_slice %31 {offsets = [1, 0, 0], sizes = [1, 32, 16], strides = [1, 1, 1]} : vector<2x32x16xf32> to vector<1x32x16xf32>
    %36 = vector.shape_cast %35 : vector<1x32x16xf32> to vector<32x16xf32>
    %37 = tpu.transpose %36, [1, 0] : vector<32x16xf32> -> vector<16x32xf32>
    %38 = tpu.concatenate %34, %37 in 0 : vector<16x32xf32>, vector<16x32xf32> -> vector<32x32xf32>
    %cst_17 = arith.constant dense<0.000000e+00> : vector<16x32xf32>
    %39 = tpu.matmul %26, %38, %cst_17 {dimension_numbers = #tpu.dot_dimension_numbers<[1], [0], [0], [1], [0, 0, 1, 1], [], []>} : vector<16x32xf32>, vector<32x32xf32>, vector<16x32xf32> -> vector<16x32xf32>
    %cst_18 = arith.constant 0.000000e+00 : f32
    %40 = vector.broadcast %cst_18 : f32 to vector<16x1xf32>
    %41 = arith.cmpf ogt, %28, %40 : vector<16x1xf32>
    %cst_19 = arith.constant 1.000000e+00 : f32
    %42 = vector.broadcast %cst_19 : f32 to vector<16x1xf32>
    %43 = arith.select %41, %28, %42 : vector<16x1xi1>, vector<16x1xf32>
    %44 = vector.broadcast %43 : vector<16x1xf32> to vector<16x32xf32>
    %45 = arith.divf %39, %44 : vector<16x32xf32>
    %cst_20 = arith.constant dense<0.000000e+00> : vector<16x32xf32>
    %46 = tpu.matmul %45, %0, %cst_20 {dimension_numbers = #tpu.dot_dimension_numbers<[1], [0], [0], [1], [0, 0, 1, 1], [], []>} : vector<16x32xf32>, vector<32x32xf32>, vector<16x32xf32> -> vector<16x32xf32>
    %47 = vector.broadcast %3 : vector<1x32xf32> to vector<16x32xf32>
    %48 = arith.addf %46, %47 : vector<16x32xf32>
    %cst_21 = arith.constant dense<0.000000e+00> : vector<32xf32>
    %49 = vector.multi_reduction <add>, %48, %cst_21 [0] : vector<16x32xf32> to vector<32xf32>
    %50 = vector.shape_cast %49 : vector<32xf32> to vector<1x32xf32>
    %cst_22 = arith.constant 1.600000e+01 : f32
    %51 = vector.broadcast %cst_22 : f32 to vector<1x32xf32>
    %52 = arith.divf %50, %51 : vector<1x32xf32>
    %53 = vector.broadcast %52 : vector<1x32xf32> to vector<16x32xf32>
    %54 = arith.subf %48, %53 : vector<16x32xf32>
    %55 = arith.mulf %54, %54 : vector<16x32xf32>
    %cst_23 = arith.constant dense<0.000000e+00> : vector<32xf32>
    %56 = vector.multi_reduction <add>, %55, %cst_23 [0] : vector<16x32xf32> to vector<32xf32>
    %57 = vector.shape_cast %56 : vector<32xf32> to vector<1x32xf32>
    %cst_24 = arith.constant 1.600000e+01 : f32
    %58 = vector.broadcast %cst_24 : f32 to vector<1x32xf32>
    %59 = arith.divf %57, %58 : vector<1x32xf32>
    %cst_25 = arith.constant 9.99999974E-6 : f32
    %60 = vector.broadcast %cst_25 : f32 to vector<1x32xf32>
    %61 = arith.addf %59, %60 : vector<1x32xf32>
    %62 = math.rsqrt %61 : vector<1x32xf32>
    %63 = arith.mulf %4, %62 : vector<1x32xf32>
    %64 = vector.broadcast %63 : vector<1x32xf32> to vector<16x32xf32>
    %65 = arith.mulf %54, %64 : vector<16x32xf32>
    %66 = vector.broadcast %5 : vector<1x32xf32> to vector<16x32xf32>
    %67 = arith.addf %65, %66 : vector<16x32xf32>
    %cst_26 = arith.constant 0.000000e+00 : f32
    %68 = vector.broadcast %cst_26 : f32 to vector<16x32xf32>
    %69 = arith.maximumf %67, %68 : vector<16x32xf32>
    %cst_27 = arith.constant dense<0.000000e+00> : vector<16x32xf32>
    %70 = tpu.matmul %69, %1, %cst_27 {dimension_numbers = #tpu.dot_dimension_numbers<[1], [0], [0], [1], [0, 0, 1, 1], [], []>} : vector<16x32xf32>, vector<32x32xf32>, vector<16x32xf32> -> vector<16x32xf32>
    %71 = vector.broadcast %6 : vector<1x32xf32> to vector<16x32xf32>
    %72 = arith.addf %70, %71 : vector<16x32xf32>
    %cst_28 = arith.constant dense<0.000000e+00> : vector<32xf32>
    %73 = vector.multi_reduction <add>, %72, %cst_28 [0] : vector<16x32xf32> to vector<32xf32>
    %74 = vector.shape_cast %73 : vector<32xf32> to vector<1x32xf32>
    %cst_29 = arith.constant 1.600000e+01 : f32
    %75 = vector.broadcast %cst_29 : f32 to vector<1x32xf32>
    %76 = arith.divf %74, %75 : vector<1x32xf32>
    %77 = vector.broadcast %76 : vector<1x32xf32> to vector<16x32xf32>
    %78 = arith.subf %72, %77 : vector<16x32xf32>
    %79 = arith.mulf %78, %78 : vector<16x32xf32>
    %cst_30 = arith.constant dense<0.000000e+00> : vector<32xf32>
    %80 = vector.multi_reduction <add>, %79, %cst_30 [0] : vector<16x32xf32> to vector<32xf32>
    %81 = vector.shape_cast %80 : vector<32xf32> to vector<1x32xf32>
    %cst_31 = arith.constant 1.600000e+01 : f32
    %82 = vector.broadcast %cst_31 : f32 to vector<1x32xf32>
    %83 = arith.divf %81, %82 : vector<1x32xf32>
    %cst_32 = arith.constant 9.99999974E-6 : f32
    %84 = vector.broadcast %cst_32 : f32 to vector<1x32xf32>
    %85 = arith.addf %83, %84 : vector<1x32xf32>
    %86 = math.rsqrt %85 : vector<1x32xf32>
    %87 = arith.mulf %7, %86 : vector<1x32xf32>
    %88 = vector.broadcast %87 : vector<1x32xf32> to vector<16x32xf32>
    %89 = arith.mulf %78, %88 : vector<16x32xf32>
    %90 = vector.broadcast %8 : vector<1x32xf32> to vector<16x32xf32>
    %91 = arith.addf %89, %90 : vector<16x32xf32>
    %cst_33 = arith.constant 0.000000e+00 : f32
    %92 = vector.broadcast %cst_33 : f32 to vector<16x32xf32>
    %93 = arith.maximumf %91, %92 : vector<16x32xf32>
    %cst_34 = arith.constant dense<0.000000e+00> : vector<16x128xf32>
    %94 = tpu.matmul %93, %2, %cst_34 {dimension_numbers = #tpu.dot_dimension_numbers<[1], [0], [0], [1], [0, 0, 1, 1], [], []>} : vector<16x32xf32>, vector<32x128xf32>, vector<16x128xf32> -> vector<16x128xf32>
    %cst_35 = arith.constant dense<0.000000e+00> : vector<128xf32>
    %95 = vector.multi_reduction <add>, %94, %cst_35 [0] : vector<16x128xf32> to vector<128xf32>
    %96 = vector.shape_cast %95 : vector<128xf32> to vector<1x128xf32>
    %cst_36 = arith.constant 1.600000e+01 : f32
    %97 = vector.broadcast %cst_36 : f32 to vector<1x128xf32>
    %98 = arith.divf %96, %97 : vector<1x128xf32>
    %99 = vector.broadcast %98 : vector<1x128xf32> to vector<16x128xf32>
    %100 = arith.subf %94, %99 : vector<16x128xf32>
    %101 = arith.mulf %100, %100 : vector<16x128xf32>
    %cst_37 = arith.constant dense<0.000000e+00> : vector<128xf32>
    %102 = vector.multi_reduction <add>, %101, %cst_37 [0] : vector<16x128xf32> to vector<128xf32>
    %103 = vector.shape_cast %102 : vector<128xf32> to vector<1x128xf32>
    %cst_38 = arith.constant 1.600000e+01 : f32
    %104 = vector.broadcast %cst_38 : f32 to vector<1x128xf32>
    %105 = arith.divf %103, %104 : vector<1x128xf32>
    %cst_39 = arith.constant 9.99999974E-6 : f32
    %106 = vector.broadcast %cst_39 : f32 to vector<1x128xf32>
    %107 = arith.addf %105, %106 : vector<1x128xf32>
    %108 = math.rsqrt %107 : vector<1x128xf32>
    %109 = arith.mulf %9, %108 : vector<1x128xf32>
    %110 = vector.broadcast %109 : vector<1x128xf32> to vector<16x128xf32>
    %111 = arith.mulf %100, %110 : vector<16x128xf32>
    %112 = vector.broadcast %10 : vector<1x128xf32> to vector<16x128xf32>
    %113 = arith.addf %111, %112 : vector<16x128xf32>
    %c0_40 = arith.constant 0 : index
    %c0_41 = arith.constant 0 : index
    %114 = vector.load %arg2[%c0_40, %c0_41] : memref<16x128xf32, #tpu.memory_space<vmem>>, vector<16x128xf32>
    tpu.vector_store %arg2[%c0_40, %c0_41], %113 {strides = array<i32>} : memref<16x128xf32, #tpu.memory_space<vmem>>, vector<16x128xf32>,
    return
  }
}

</mosaic_0001>

<bundles_post_ra>
// kernel: tpu_custom_call.1
= control target key start
LH: loop header
LB: loop body
LE: loop exit
PB: predicated region body
PF: predicated region fallthrough
CT: control target
= control target key end

     0   :  { %9 = vsyncpa [#allocation3], 0  ;;  %s883_s0 = inlined_call_operand.vmem [shape: f32[2,32,16], index: 0, kind: input, shape index: {}]   ;;  %s884_s1 = inlined_call_operand.hbm [shape: f32[112,128], index: 1, kind: input, shape index: {}]   ;;  %s885_s2 = inlined_call_operand.hbm [shape: f32[16,128], index: 2, kind: output, shape index: {0}]   ;;  %s886_s3 = inlined_call_operand.vmem [shape: s32[16,1], index: 3, kind: output, shape index: {1}]  }
   0x1   :  { %10 = vsyncpa [#allocation4], 0  ;;  %s787_s12 = smov [#allocation2]  }
   0x2   :  { %s18_s13 = sshll.u32 %s787_s12, 4  ;;  %s19_s13 = int_to_ptr.vmem [resolvable:$true] %s18_s13 }
   0x3   :  { %s751_s14 = scalar_lea.vmem %s19_s13, 1792  ;;  %p756_p1 = scmp.lt.s32.totalorder %s19_s13, %s19_s13 }
   0x4   :  { %p752_p0 = scmp.ne.s32.totalorder %s19_s13, %s751_s14  ;;  %p757_p2 = scmp.lt.s32.totalorder %s751_s14, %s751_s14 }
   0x6   :  { %p758_p3 = por %p757_p2, %p756_p1 }
   0x8   :  { %p759_p4 = pnand %p758_p3, %p752_p0 }
   0xa   :  { %762 = shalt.err (!%p759_p4)
}
   0xb   :  { %s788_s15 = smov 128   ;;  %s789_s16 = smov 8  }
   0xc   :  { %24 = dma.hbm_to_vmem [thread:$0]  %s884_s1, 1792, %s19_s13, [#allocation3], %s788_s15, %s788_s15, %s789_s16  }
   0xd   :  { %783 = dma.done.wait [#allocation3], 1792  }
   0xe   :  { %784 = vsyncadd [#allocation3], 4294965504  ;;  %v49_v0 = vlaneseq  ;;  %v91_v2 = vld [vmem:[%s883_s0 + $0x20] sm:$0xff]  ;;  %v92_v4 = vld [vmem:[%s883_s0 + $0x28] sm:$0xff]  ;;  %v790_v14 = vmov 0.0   ;;  %vm75_vm3 = vcmask 261120  }
   0xf   :  { %v87_v3 = vld [vmem:[%s883_s0] sm:$0xff]  ;;  %127 = vxpose.xlu0.b32.start [1/4] (short) (narrow) %v91_v2, 16  ;;  %v88_v5 = vld [vmem:[%s883_s0 + $0x8] sm:$0xff]  ;;  %v93_v12 = vld [vmem:[%s883_s0 + $0x30] sm:$0xff]  ;;  %vm84_vm7 = vcmask 7168  }
  0x10   :  { %v818_v1 = vshrl.u32 %v49_v0, 7  ;;  %95 = vxpose.xlu1.b32.start [1/4] (short) (narrow) %v87_v3, 16  ;;  %v53_v6 = vand.u32 127, %v49_v0  ;;  %v640_v11 = vld [vmem:[#allocation2 + $0x68] ss:$0 sm:$0xff]  ;;  %v89_v13 = vld [vmem:[%s883_s0 + $0x10] sm:$0xff] }
  0x11   :  { %v94_v16 = vld [vmem:[%s883_s0 + $0x38] sm:$0xff]  ;;  %v30_v36 = vld [vmem:[#allocation2 + $0x10] sm:$0xff]  ;;  %v29_v37 = vld [vmem:[#allocation2 + $0x8] sm:$0xff] }
  0x12   :  { %v59_v7 = vand.u32 7, %v818_v1  ;;  %v54_v8 = vshra.s32 %v818_v1, 3  ;;  %v56_v9 = vshra.s32 %v53_v6, 4  ;;  %v90_v17 = vld [vmem:[%s883_s0 + $0x18] sm:$0xff]  ;;  %v51_v18 = vadd.s32 8, %v818_v1  ;;  %v28_v38 = vld [vmem:[#allocation2] sm:$0xff] }
  0x13   :  { %128 = vxpose.xlu0.b32.cont [2/4] (short) (narrow) %v92_v4, 16  ;;  %v31_v25 = vld [vmem:[#allocation2 + $0x18] sm:$0xff]  ;;  %v34_v48 = vld [vmem:[#allocation2 + $0x30] sm:$0xff]  ;;  %v33_v49 = vld [vmem:[#allocation2 + $0x28] sm:$0xff] }
  0x14   :  { %v61_v10 = vcvt.s32.f32 %v59_v7  ;;  %96 = vxpose.xlu1.b32.cont [2/4] (short) (narrow) %v88_v5, 16  ;;  %vm57_vm0 = vcmp.eq.s32.totalorder %v54_v8, %v56_v9  ;;  %v60_v19 = vand.u32 7, %v51_v18  ;;  %v55_v20 = vshra.s32 %v51_v18, 3  ;;  %691 = vmatprep.subr.mxu1 %v31_v25  ;;  %v35_v47 = vld [vmem:[#allocation2 + $0x38] sm:$0xff]  ;;  %v32_v50 = vld [vmem:[#allocation2 + $0x20] sm:$0xff] }
  0x15   :  { %692 = vmatpush3.msra.mxu1 %v31_v25  ;;  %v645_v51 = vld [vmem:[#allocation2 + $0x60] ss:$0 sm:$0xff]  ;;  %v41_v18 = vld [vmem:[#allocation2 + $0x61] sm:$0x1] }
  0x16   :  { %vm67_vm1 = vcmp.eq.f32.partialorder %v640_v11, %v61_v10  ;;  %v62_v21 = vcvt.s32.f32 %v60_v19  ;;  %vm58_vm4 = vcmp.eq.s32.totalorder %v55_v20, %v56_v9  ;;  %693 = vmatprep.subr.mxu1 %v30_v36  ;;  %v864_v19 = vsub.s32 0, %v818_v1  ;;  %v38_v1 = vld [vmem:[#allocation2 + $0x50] sm:$0xff] }
  0x17   :  { %vm69_vm2 = vmand %vm57_vm0, %vm67_vm1  ;;  %129 = vxpose.xlu0.b32.cont [3/4] (short) (narrow) %v93_v12, 16  ;;  %694 = vmatpush3.msra.mxu1 %v30_v36 }
  0x18   :  { %v641_v15 = vsel %vm69_vm2, 1.0, %v790_v14  ;;  %97 = vxpose.xlu1.b32.cont [3/4] (short) (narrow) %v89_v13, 16  ;;  %vm68_vm5 = vcmp.eq.f32.partialorder %v640_v11, %v62_v21  ;;  %695 = vmatprep.subr.mxu1 %v29_v37 }
  0x19   :  { %688 = vmatprep.mubr.msk.f32.mxu0 %vm75_vm3, %v641_v15  ;;  %vm70_vm6 = vmand %vm58_vm4, %vm68_vm5  ;;  %v76_v24 = vsel %vm75_vm3, %v641_v15, 0.0  ;;  %696 = vmatpush3.msra.mxu1 %v29_v37 }
  0x1a   :  { %v642_v22 = vsel %vm70_vm6, 1.0, %v790_v14  ;;  %697 = vmatprep.subr.mxu1 %v28_v38 }
  0x1b   :  { %130 = vxpose.xlu0.b32.end [4/4] (short) (narrow) %v94_v16, 16  ;;  %v79_v23 = vsel %vm75_vm3, %v642_v22, 0.0  ;;  %698 = vmatpush3.msra.mxu1 %v28_v38 }
  0x1c   :  { %98 = vxpose.xlu1.b32.end [4/4] (short) (narrow) %v90_v17, 16 }
  0x43   :  { %80 = vadd.xlane.f32.xlu1 %v79_v23  ;;  %v648_v23 = vld [vmem:[#allocation2 + $0x62] ss:$0 sm:$0xff] }
  0x48   :  { %77 = vadd.xlane.f32.xlu0 %v76_v24 }
  0x8b   :  { %v143_v26 = vpop.trf.xlu0 }
  0x8c   :  { %v111_v27 = vpop.trf.xlu1 }
  0x8f   :  { %v144_v28 = vpop.trf.xlu0 }
  0x90   :  { %680 = vmatprep.subr.mxu0 %v144_v28  ;;  %v112_v29 = vpop.trf.xlu1 }
  0x91   :  { %681 = vmatpush3.msra.mxu0 %v144_v28 }
  0x92   :  { %682 = vmatprep.subr.mxu0 %v143_v26 }
  0x93   :  { %683 = vmatpush3.msra.mxu0 %v143_v26 }
  0x94   :  { %684 = vmatprep.subr.mxu0 %v112_v29 }
  0x95   :  { %685 = vmatpush3.msra.mxu0 %v112_v29 }
  0x96   :  { %686 = vmatprep.subr.mxu0 %v111_v27 }
  0x97   :  { %687 = vmatpush3.msra.mxu0 %v111_v27 }
  0x98   :  { %689 = vmatmul.mubr.msk.f32.vlgmr.msra.gmra.mxu0 %vm75_vm3, %v642_v22  ;;  %702 = vmatprep.subr.mxu0 %v35_v47 }
  0x99   :  { %703 = vmatpush3.msra.mxu0 %v35_v47 }
  0x9a   :  { %704 = vmatprep.subr.mxu0 %v34_v48 }
  0x9b   :  { %705 = vmatpush3.msra.mxu0 %v34_v48 }
  0x9c   :  { %706 = vmatprep.subr.mxu0 %v33_v49 }
  0x9d   :  { %707 = vmatpush3.msra.mxu0 %v33_v49 }
  0x9e   :  { %708 = vmatprep.subr.mxu0 %v32_v50 }
  0x9f   :  { %709 = vmatpush3.msra.mxu0 %v32_v50 }
  0xcc   :  { %v81_v30 = vpop.xlane.xlu1 %80 }
  0xcd   :  { %v726_v31 = vtrunc.f32 %v81_v30  ;;  %vm241_vm9 = vcmp.gt.f32.partialorder %v81_v30, 0.0 }
  0xce   :  { %v243_v40 = vsel %vm241_vm9, %v81_v30, 1.0  ;;  %v39_v30 = vld [vmem:[#allocation2 + $0x58] sm:$0xff] }
  0xcf   :  { %v727_v32 = vcvt.f32.s32 %v726_v31  ;;  %713 = vmatprep.subr.mxu1 %v39_v30  ;;  %v37_v31 = vld [vmem:[#allocation2 + $0x48] sm:$0xff] }
  0xd1   :  { %86 = vst.msk [vmem:[%s886_s3 + $0x8] sm:$0xff] %vm84_vm7, %v727_v32  ;;  %v78_v33 = vpop.xlane.xlu0 %77  ;;  %v36_v32 = vld [vmem:[#allocation2 + $0x40] sm:$0xff] }
  0xd2   :  { %v724_v34 = vtrunc.f32 %v78_v33  ;;  %vm240_vm8 = vcmp.gt.f32.partialorder %v78_v33, 0.0 }
  0xd3   :  { %v242_v39 = vsel %vm240_vm8, %v78_v33, 1.0  ;;  %v649_v33 = vld [vmem:[#allocation2 + $0x63] ss:$0 sm:$0xff] }
  0xd4   :  { %v725_v35 = vcvt.f32.s32 %v724_v34  ;;  %733 = vrcp.f32 %v242_v39 }
  0xd5   :  { %735 = vrcp.f32 %v243_v40 }
  0xd6   :  { %85 = vst.msk [vmem:[%s886_s3] sm:$0xff] %vm84_vm7, %v725_v35  ;;  %s791_s3 = smov [#allocation5]  }
  0xd7   :  { %s624_s10 = sshll.u32 %s791_s3, 4  ;;  %s625_s10 = int_to_ptr.vmem [resolvable:$true] %s624_s10 }
  0xd8   :  { %s763_s11 = scalar_lea.vmem %s625_s10, 256  ;;  %p768_p6 = scmp.lt.s32.totalorder %s625_s10, %s625_s10 }
  0xd9   :  { %p764_p5 = scmp.ne.s32.totalorder %s625_s10, %s763_s11  ;;  %p769_p7 = scmp.lt.s32.totalorder %s763_s11, %s763_s11 }
  0xdb   :  { %p770_p8 = por %p769_p7, %p768_p6 }
  0xdd   :  { %p771_p9 = pnand %p770_p8, %p764_p5 }
  0xe1   :  { %v734_v41 = vpop.eup %733 }
  0xe2   :  { %v736_v43 = vpop.eup %735 }
 0x158   :  { %v690_v42 = vpop.f32.mrf.mxu0 }
 0x159   :  { %v247_v46 = vmul.f32 %v736_v43, %v690_v42 }
 0x15a   :  { %v231_v44 = vpop.f32.mrf.mxu0 }
 0x15b   :  { %v245_v45 = vmul.f32 %v734_v41, %v231_v44 }
 0x15d   :  { %699 = vmatprep.mubr.msk.f32.mxu1 %vm75_vm3, %v245_v45 }
 0x15e   :  { %700 = vmatmul.mubr.msk.f32.vlgmr.msra.gmra.mxu1 %vm75_vm3, %v247_v46 }
 0x15f   :  { %714 = vmatpush3.msra.mxu1 %v39_v30 }
 0x160   :  { %715 = vmatprep.subr.mxu1 %v38_v1 }
 0x161   :  { %716 = vmatpush3.msra.mxu1 %v38_v1 }
 0x162   :  { %717 = vmatprep.subr.mxu1 %v37_v31 }
 0x163   :  { %718 = vmatpush3.msra.mxu1 %v37_v31 }
 0x164   :  { %719 = vmatprep.subr.mxu1 %v36_v32 }
 0x165   :  { %720 = vmatpush3.msra.mxu1 %v36_v32 }
 0x21e   :  { %v701_v52 = vpop.f32.mrf.mxu1 }
 0x21f   :  { %v330_v53 = vadd.f32 %v701_v52, %v645_v51 }
 0x220   :  { %v324_v54 = vpop.f32.mrf.mxu1 }
 0x221   :  { %v325_v55 = vadd.f32 %v645_v51, %v324_v54  ;;  %v334_v56 = vsel %vm75_vm3, %v330_v53, 0.0 }
 0x223   :  { %v333_v57 = vsel %vm75_vm3, %v325_v55, 0.0 }
 0x224   :  { %v335_v58 = vadd.f32 %v334_v56, %v333_v57 }
 0x226   :  { %v336_v59 = vrot.slane %v335_v58, 4 }
 0x228   :  { %v337_v60 = vadd.f32 %v336_v59, %v335_v58 }
 0x22a   :  { %v338_v61 = vrot.slane %v337_v60, 2 }
 0x22c   :  { %v339_v62 = vadd.f32 %v338_v61, %v337_v60 }
 0x22e   :  { %v340_v63 = vrot.slane %v339_v62, 1 }
 0x230   :  { %v341_v0 = vadd.f32 %v340_v63, %v339_v62  ;;  %v44_v63 = vld [vmem:[#allocation2 + $0x64] sm:$0x1] }
 0x232   :  { %v343_v2 = vmul.f32 0.0625, %v341_v0 }
 0x234   :  { %v344_v3 = vsub.f32 %v325_v55, %v343_v2  ;;  %v345_v4 = vsub.f32 %v330_v53, %v343_v2 }
 0x236   :  { %v346_v5 = vmul.f32 %v344_v3, %v344_v3  ;;  %v347_v6 = vmul.f32 %v345_v4, %v345_v4 }
 0x238   :  { %v348_v7 = vsel %vm75_vm3, %v346_v5, 0.0  ;;  %v349_v8 = vsel %vm75_vm3, %v347_v6, 0.0 }
 0x239   :  { %v350_v9 = vadd.f32 %v349_v8, %v348_v7 }
 0x23b   :  { %v351_v10 = vrot.slane %v350_v9, 4 }
 0x23d   :  { %v352_v11 = vadd.f32 %v351_v10, %v350_v9 }
 0x23f   :  { %v353_v12 = vrot.slane %v352_v11, 2 }
 0x241   :  { %v354_v13 = vadd.f32 %v353_v12, %v352_v11 }
 0x243   :  { %v355_v14 = vrot.slane %v354_v13, 1 }
 0x245   :  { %v356_v15 = vadd.f32 %v355_v14, %v354_v13 }
 0x247   :  { %v357_v16 = vmul.f32 0.0625, %v356_v15 }
 0x249   :  { %v358_v17 = vadd.f32 1e-05, %v357_v16 }
 0x24b   :  { %737 = vrsqrt.f32 %v358_v17 }
 0x258   :  { %v738_v20 = vpop.eup %737 }
 0x259   :  { %v360_v21 = vmul.f32 %v738_v20, %v41_v18 }
 0x25b   :  { %v364_v22 = vrot.slane %v360_v21, %v864_v19 }
 0x25d   :  { %v365_v24 = vmul.f32 %v364_v22, %v344_v3  ;;  %v366_v25 = vmul.f32 %v364_v22, %v345_v4  ;;  %v652_v4 = vld [vmem:[#allocation2 + $0x65] ss:$0 sm:$0xff] }
 0x25f   :  { %v371_v26 = vadd.f32 %v648_v23, %v365_v24  ;;  %v372_v27 = vadd.f32 %v648_v23, %v366_v25 }
 0x261   :  { %v373_v28 = vmax.f32 %v371_v26, 0.0  ;;  %v374_v29 = vmax.f32 %v372_v27, 0.0 }
 0x263   :  { %710 = vmatprep.mubr.msk.f32.mxu0 %vm75_vm3, %v373_v28 }
 0x264   :  { %711 = vmatmul.mubr.msk.f32.vlgmr.msra.gmra.mxu0 %vm75_vm3, %v374_v29 }
 0x324   :  { %v712_v34 = vpop.f32.mrf.mxu0 }
 0x325   :  { %v457_v35 = vadd.f32 %v712_v34, %v649_v33  ;;  %v46_v34 = vld [vmem:[#allocation2 + $0x66] sm:$0x1] }
 0x326   :  { %v451_v36 = vpop.f32.mrf.mxu0 }
 0x327   :  { %v452_v37 = vadd.f32 %v649_v33, %v451_v36  ;;  %v461_v38 = vsel %vm75_vm3, %v457_v35, 0.0 }
 0x329   :  { %v460_v39 = vsel %vm75_vm3, %v452_v37, 0.0 }
 0x32a   :  { %v462_v40 = vadd.f32 %v461_v38, %v460_v39  ;;  %v655_v38 = vld [vmem:[#allocation2 + $0x67] ss:$0 sm:$0xff] }
 0x32c   :  { %v463_v41 = vrot.slane %v462_v40, 4 }
 0x32e   :  { %v464_v42 = vadd.f32 %v463_v41, %v462_v40 }
 0x330   :  { %v465_v43 = vrot.slane %v464_v42, 2 }
 0x332   :  { %v466_v44 = vadd.f32 %v465_v43, %v464_v42 }
 0x334   :  { %v467_v45 = vrot.slane %v466_v44, 1 }
 0x336   :  { %v468_v46 = vadd.f32 %v467_v45, %v466_v44 }
 0x338   :  { %v469_v47 = vmul.f32 0.0625, %v468_v46 }
 0x33a   :  { %v470_v48 = vsub.f32 %v452_v37, %v469_v47  ;;  %v471_v49 = vsub.f32 %v457_v35, %v469_v47 }
 0x33c   :  { %v472_v50 = vmul.f32 %v470_v48, %v470_v48  ;;  %v473_v51 = vmul.f32 %v471_v49, %v471_v49 }
 0x33e   :  { %v474_v52 = vsel %vm75_vm3, %v472_v50, 0.0  ;;  %v475_v53 = vsel %vm75_vm3, %v473_v51, 0.0 }
 0x33f   :  { %v476_v54 = vadd.f32 %v475_v53, %v474_v52 }
 0x341   :  { %v477_v55 = vrot.slane %v476_v54, 4 }
 0x343   :  { %v478_v56 = vadd.f32 %v477_v55, %v476_v54 }
 0x345   :  { %v479_v57 = vrot.slane %v478_v56, 2 }
 0x347   :  { %v480_v58 = vadd.f32 %v479_v57, %v478_v56 }
 0x349   :  { %v481_v59 = vrot.slane %v480_v58, 1 }
 0x34b   :  { %v482_v60 = vadd.f32 %v481_v59, %v480_v58 }
 0x34d   :  { %v483_v61 = vmul.f32 0.0625, %v482_v60 }
 0x34f   :  { %v484_v62 = vadd.f32 1e-05, %v483_v61 }
 0x351   :  { %739 = vrsqrt.f32 %v484_v62 }
 0x35e   :  { %v740_v0 = vpop.eup %739 }
 0x35f   :  { %v486_v2 = vmul.f32 %v740_v0, %v44_v63 }
 0x361   :  { %v490_v3 = vrot.slane %v486_v2, %v864_v19 }
 0x363   :  { %v491_v5 = vmul.f32 %v490_v3, %v470_v48  ;;  %v492_v6 = vmul.f32 %v490_v3, %v471_v49 }
 0x365   :  { %v497_v7 = vadd.f32 %v652_v4, %v491_v5  ;;  %v498_v8 = vadd.f32 %v652_v4, %v492_v6 }
 0x367   :  { %v499_v9 = vmax.f32 %v497_v7, 0.0  ;;  %v500_v10 = vmax.f32 %v498_v8, 0.0 }
 0x369   :  { %721 = vmatprep.mubr.msk.f32.mxu1 %vm75_vm3, %v499_v9 }
 0x36a   :  { %722 = vmatmul.mubr.msk.f32.vlgmr.msra.gmra.mxu1 %vm75_vm3, %v500_v10 }
 0x42a   :  { %v723_v11 = vpop.f32.mrf.mxu1 }
 0x42c   :  { %v573_v12 = vpop.f32.mrf.mxu1 }
 0x42d   :  { %v582_v13 = vadd.f32 %v723_v11, %v573_v12 }
 0x42f   :  { %v583_v14 = vrot.slane %v582_v13, 4 }
 0x431   :  { %v584_v15 = vadd.f32 %v583_v14, %v582_v13 }
 0x433   :  { %v585_v16 = vrot.slane %v584_v15, 2 }
 0x435   :  { %v586_v17 = vadd.f32 %v585_v16, %v584_v15 }
 0x437   :  { %v587_v18 = vrot.slane %v586_v17, 1 }
 0x439   :  { %v588_v20 = vadd.f32 %v587_v18, %v586_v17 }
 0x43b   :  { %v589_v21 = vmul.f32 0.0625, %v588_v20 }
 0x43d   :  { %v590_v22 = vsub.f32 %v573_v12, %v589_v21  ;;  %v591_v23 = vsub.f32 %v723_v11, %v589_v21 }
 0x43f   :  { %v592_v24 = vmul.f32 %v590_v22, %v590_v22  ;;  %v593_v25 = vmul.f32 %v591_v23, %v591_v23 }
 0x441   :  { %v594_v26 = vadd.f32 %v593_v25, %v592_v24 }
 0x443   :  { %v595_v27 = vrot.slane %v594_v26, 4 }
 0x445   :  { %v596_v28 = vadd.f32 %v595_v27, %v594_v26 }
 0x447   :  { %v597_v29 = vrot.slane %v596_v28, 2 }
 0x449   :  { %v598_v30 = vadd.f32 %v597_v29, %v596_v28 }
 0x44b   :  { %v599_v1 = vrot.slane %v598_v30, 1 }
 0x44d   :  { %v600_v31 = vadd.f32 %v599_v1, %v598_v30 }
 0x44f   :  { %v601_v32 = vmul.f32 0.0625, %v600_v31 }
 0x451   :  { %v602_v33 = vadd.f32 1e-05, %v601_v32 }
 0x453   :  { %741 = vrsqrt.f32 %v602_v33 }
 0x460   :  { %v742_v35 = vpop.eup %741 }
 0x461   :  { %v604_v36 = vmul.f32 %v742_v35, %v46_v34 }
 0x463   :  { %v608_v37 = vrot.slane %v604_v36, %v864_v19 }
 0x465   :  { %v609_v39 = vmul.f32 %v608_v37, %v590_v22  ;;  %v610_v40 = vmul.f32 %v608_v37, %v591_v23 }
 0x467   :  { %v615_v41 = vadd.f32 %v655_v38, %v609_v39  ;;  %v616_v42 = vadd.f32 %v655_v38, %v610_v40 }
 0x469   :  { %617 = vst [vmem:[#allocation5] sm:$0xff] %v615_v41  ;;  %618 = vst [vmem:[#allocation5 + $0x8] sm:$0xff] %v616_v42 }
 0x46a   :  { %774 = shalt.err (!%p771_p9)
}
 0x46b   :  { %630 = dma.vmem_to_hbm [thread:$0]  %s625_s10, 256, %s885_s2, [#allocation4], %s788_s15, %s788_s15, %s789_s16  }
 0x46c   :  { %785 = dma.done.wait [#allocation4], 256  }
 0x46d   :  { %786 = vsyncadd [#allocation4], 4294967040 }
 0x46e   :  { %638 = vsyncpa [#allocation3], 1 }
 0x46f   :  { %639 = vsyncpa [#allocation4], 1 }

</bundles_post_ra>
